<compile_context>
chip_gen: v7x
topology: tpu7x:2x2x1
jax: 0.10.0
libtpu: 0.0.40
codegen_flags: <defaults>
</compile_context>

<pallas_src>
import functools
import math

import jax
import jax.numpy as jnp
from jax.experimental import pallas as pl
from jax.experimental.pallas import tpu as pltpu


_LANE = 128
_SUBLANE = 8
# Per-block target. With double-buffered input + output blocks (~4x in flight)
# plus f32 temporaries this stays well inside every generation's scoped VMEM
# (v5e 16 MiB default, v7x 64 MiB physical) while being large enough to
# amortize the ~0.35 us/step grid overhead (measured ~85% of HBM roofline at
# ~1-2 MiB blocks).
_TARGET_BLOCK_BYTES = 2 * 1024 * 1024
_VMEM_LIMIT_BYTES = 32 * 1024 * 1024


def _s(x):
    # StableMax kernel function: linear for x >= 0, slow decay for x < 0.
    return jnp.where(x >= 0.0, x + 1.0, 1.0 / (1.0 - x))


def _recip(d):
    # EUP approximate reciprocal + one Newton-Raphson step -> ~f32 accuracy
    # without a full per-element VPU divide.
    r = pl.reciprocal(d, approx=True)
    return r * (2.0 - d * r)


def _stablemax_rowmajor_kernel(x_ref, o_ref):
    # Generic path. Block: (row_tile, n), reduction over the last (lane) axis.
    x = x_ref[...].astype(jnp.float32)
    s_x = _s(x)
    denom = jnp.sum(s_x, axis=-1, keepdims=True)
    o_ref[...] = (s_x * _recip(denom)).astype(o_ref.dtype)


def _stablemax_folded_kernel(x_ref, o_ref, *, n):
    # Lane-dense path for n < 128 with 128 % n == 0 (n is a power of two).
    # Block: (row_tile, 128); each lane-row packs 128 // n logical rows as
    # contiguous segments of n lanes. The per-segment sums are computed (and
    # broadcast back to every lane of the segment) with a block-diagonal ones
    # matmul on the otherwise-idle MXU -- no reshapes / cross-lane shuffles.
    x = x_ref[...].astype(jnp.float32)
    s_x = _s(x)

    lane_i = jax.lax.broadcasted_iota(jnp.int32, (_LANE, _LANE), 0)
    lane_j = jax.lax.broadcasted_iota(jnp.int32, (_LANE, _LANE), 1)
    blk = jnp.int32(-n)  # == ~(n - 1) for power-of-two n
    seg = (jnp.bitwise_and(lane_i, blk) == jnp.bitwise_and(lane_j, blk))
    seg = seg.astype(jnp.float32)

    denom = jnp.dot(
        s_x, seg,
        precision=jax.lax.Precision.HIGHEST,
        preferred_element_type=jnp.float32,
    )
    o_ref[...] = (s_x * _recip(denom)).astype(o_ref.dtype)


def _round_down(v, m):
    return (v // m) * m


def stablemax(x):
    """StableMax over the last axis of x (any rank >= 1), Pallas TPU kernel."""
    orig_shape = x.shape
    n = orig_shape[-1]
    rows = math.prod(orig_shape[:-1]) if len(orig_shape) > 1 else 1
    if rows == 0 or n == 0:
        return x

    # Sized for the f32 compute copy in VMEM (inputs may be narrower).
    itemsize = max(jnp.dtype(x.dtype).itemsize, 4)

    fold = _LANE // n if (n < _LANE and _LANE % n == 0) else 1
    use_fold = fold > 1 and rows % fold == 0

    if use_fold:
        v_rows = rows // fold
        width = _LANE
        kernel = functools.partial(_stablemax_folded_kernel, n=n)
    else:
        v_rows = rows
        width = n
        kernel = _stablemax_rowmajor_kernel

    # Largest row tile (multiple of 8 sublanes) around the block budget.
    row_tile = _round_down(_TARGET_BLOCK_BYTES // (width * itemsize), _SUBLANE)
    row_tile = max(row_tile, _SUBLANE)
    if row_tile >= v_rows:
        row_tile = v_rows  # single block == full dim, always legal
    # TODO(synk): if even an (8, n) block does not fit VMEM (n in the 100K+
    # range on v7x's 64 MiB), add a second "arbitrary" grid axis over n with a
    # VMEM scratch accumulator (two-pass: sum then normalize).

    x2 = x.reshape(v_rows, width)  # free: row-major contiguous fold

    out = pl.pallas_call(
        kernel,
        out_shape=jax.ShapeDtypeStruct((v_rows, width), x.dtype),
        grid=(pl.cdiv(v_rows, row_tile),),  # ragged tail handled by Pallas;
                                            # rows are independent so padded
                                            # garbage never contaminates output.
        in_specs=[pl.BlockSpec((row_tile, width), lambda i: (i, 0))],
        out_specs=pl.BlockSpec((row_tile, width), lambda i: (i, 0)),
        compiler_params=pltpu.CompilerParams(
            dimension_semantics=("parallel",),
            vmem_limit_bytes=_VMEM_LIMIT_BYTES,
        ),
    )(x2)

    return out.reshape(orig_shape)


def stablemax_ref(x):
    """Pure-JAX reference mirroring the PyTorch forward exactly."""
    xf = x.astype(jnp.float32)
    pos = (xf >= 0.0).astype(jnp.float32)
    neg = (xf < 0.0).astype(jnp.float32)
    s_x = pos * (xf + 1.0) + neg * (1.0 / (1.0 - xf))
    return (s_x / jnp.sum(s_x, axis=-1, keepdims=True)).astype(x.dtype)


if __name__ == "__main__":
    key = jax.random.PRNGKey(0)
    # NCHW-style input; StableMax normalizes over the last axis (n = 16 -> uses
    # the lane-dense folded path).
    x = jax.random.normal(key, (2, 4, 16, 16), dtype=jnp.float32)

    out = jax.block_until_ready(stablemax(x))
    ref = stablemax_ref(x)
    assert out.shape == x.shape
    assert jnp.allclose(out, ref, atol=1e-5, rtol=1e-5), "mismatch vs reference"
    assert jnp.allclose(jnp.sum(out, axis=-1), 1.0, atol=1e-5)

    # Also exercise the generic (wide-feature) row-major path.
    x2 = jax.random.normal(jax.random.PRNGKey(0), (8, 256), dtype=jnp.float32)
    out2 = jax.block_until_ready(stablemax(x2))
    assert jnp.allclose(out2, stablemax_ref(x2), atol=1e-5, rtol=1e-5)

    print("KERNEL_OK")
</pallas_src>

<mosaic_0001>
module attributes {stable_mosaic.version = 11 : i64} {
  func.func @_stablemax_folded_kernel(%arg0: i32, %arg1: memref<16x128xf32, #tpu.memory_space<vmem>>, %arg2: memref<16x128xf32, #tpu.memory_space<vmem>>) attributes {dimension_semantics = [#tpu.dimension_semantics<parallel>], iteration_bounds = array<i64: 1>, scalar_prefetch = 0 : i64, scratch_operands = 0 : i64, tpu.core_type = #tpu.core_type<tc>, window_params = [{transform_indices = @transform_0, window_bounds = array<i64: 16, 128>}, {transform_indices = @transform_1, window_bounds = array<i64: 16, 128>}]} {
    %c0 = arith.constant 0 : index
    %c0_0 = arith.constant 0 : index
    %0 = vector.load %arg1[%c0, %c0_0] : memref<16x128xf32, #tpu.memory_space<vmem>>, vector<16x128xf32>
    %cst = arith.constant 0.000000e+00 : f32
    %1 = vector.broadcast %cst : f32 to vector<16x128xf32>
    %2 = arith.cmpf oge, %0, %1 : vector<16x128xf32>
    %cst_1 = arith.constant 1.000000e+00 : f32
    %3 = vector.broadcast %cst_1 : f32 to vector<16x128xf32>
    %4 = arith.addf %0, %3 : vector<16x128xf32>
    %cst_2 = arith.constant 1.000000e+00 : f32
    %5 = vector.broadcast %cst_2 : f32 to vector<16x128xf32>
    %6 = arith.subf %5, %0 : vector<16x128xf32>
    %cst_3 = arith.constant 1.000000e+00 : f32
    %7 = vector.broadcast %cst_3 : f32 to vector<16x128xf32>
    %8 = arith.divf %7, %6 : vector<16x128xf32>
    %9 = arith.select %2, %4, %8 : vector<16x128xi1>, vector<16x128xf32>
    %10 = tpu.iota {dimensions = array<i32: 0>} : vector<128x128xi32>
    %11 = tpu.iota {dimensions = array<i32: 1>} : vector<128x128xi32>
    %c-16_i32 = arith.constant -16 : i32
    %12 = vector.broadcast %c-16_i32 : i32 to vector<128x128xi32>
    %13 = arith.andi %10, %12 : vector<128x128xi32>
    %c-16_i32_4 = arith.constant -16 : i32
    %14 = vector.broadcast %c-16_i32_4 : i32 to vector<128x128xi32>
    %15 = arith.andi %11, %14 : vector<128x128xi32>
    %16 = arith.cmpi eq, %13, %15 : vector<128x128xi32>
    %17 = arith.extui %16 : vector<128x128xi1> to vector<128x128xi32>
    %18 = arith.sitofp %17 : vector<128x128xi32> to vector<128x128xf32>
    %cst_5 = arith.constant dense<0.000000e+00> : vector<16x128xf32>
    %19 = tpu.matmul %9, %18, %cst_5 {dimension_numbers = #tpu.dot_dimension_numbers<[1], [0], [0], [1], [0, 0, 1, 1], [], []>, precision = #tpu.contract_precision<fp32>} : vector<16x128xf32>, vector<128x128xf32>, vector<16x128xf32> -> vector<16x128xf32>
    %20 = tpu.reciprocal %19 {approx = true} : vector<16x128xf32> -> vector<16x128xf32>
    %21 = arith.mulf %19, %20 : vector<16x128xf32>
    %cst_6 = arith.constant 2.000000e+00 : f32
    %22 = vector.broadcast %cst_6 : f32 to vector<16x128xf32>
    %23 = arith.subf %22, %21 : vector<16x128xf32>
    %24 = arith.mulf %20, %23 : vector<16x128xf32>
    %25 = arith.mulf %9, %24 : vector<16x128xf32>
    %c0_7 = arith.constant 0 : index
    %c0_8 = arith.constant 0 : index
    %26 = vector.load %arg2[%c0_7, %c0_8] : memref<16x128xf32, #tpu.memory_space<vmem>>, vector<16x128xf32>
    tpu.vector_store %arg2[%c0_7, %c0_8], %25 {strides = array<i32>} : memref<16x128xf32, #tpu.memory_space<vmem>>, vector<16x128xf32>,
    return
  }
  func.func @transform_0(%arg0: i32) -> (i32, i32) {
    %c0_i32 = arith.constant 0 : i32
    %c0_i32_0 = arith.constant 0 : i32
    return %arg0, %c0_i32 : i32, i32
  }
  func.func @transform_1(%arg0: i32) -> (i32, i32) {
    %c0_i32 = arith.constant 0 : i32
    %c0_i32_0 = arith.constant 0 : i32
    return %arg0, %c0_i32 : i32, i32
  }
}

</mosaic_0001>

<bundles_post_ra>
// kernel: tpu_custom_call.1
= control target key start
LH: loop header
LB: loop body
LE: loop exit
PB: predicated region body
PF: predicated region fallthrough
CT: control target
= control target key end

     0   :  { %6 = vsyncpa [#allocation3], 0  ;;  %s2001_s0 = inlined_call_operand.hbm [shape: f32[16,128], index: 0, kind: input, shape index: {}]   ;;  %s2002_s1 = inlined_call_operand.hbm [shape: f32[16,128], index: 1, kind: output, shape index: {}]  }
   0x1   :  { %7 = vsyncpa [#allocation4], 0  ;;  %s1480_s6 = smov [#allocation2]   ;;  %s1432_s10 = scalar_lea.hbm %s2001_s0, 256 }
   0x2   :  { %s13_s7 = sshll.u32 %s1480_s6, 4  ;;  %p1433_p0 = scmp.ne.s32.totalorder %s2001_s0, %s1432_s10  ;;  %s14_s7 = int_to_ptr.vmem [resolvable:$true] %s13_s7 }
   0x3   :  { %p1436_p1 = scmp.lt.u32.totalorder %s1432_s10, %s2001_s0 }
   0x5   :  { %p1438_p2 = pnand %p1436_p1, %p1433_p0 }
   0x7   :  { %1441 = shalt.err (!%p1438_p2)
}
   0x8   :  { %s1442_s15 = scalar_lea.vmem %s14_s7, 256  ;;  %p1447_p4 = scmp.lt.s32.totalorder %s14_s7, %s14_s7 }
   0x9   :  { %p1443_p3 = scmp.ne.s32.totalorder %s14_s7, %s1442_s15  ;;  %p1448_p5 = scmp.lt.s32.totalorder %s1442_s15, %s1442_s15 }
   0xb   :  { %p1449_p6 = por %p1448_p5, %p1447_p4 }
   0xd   :  { %p1450_p7 = pnand %p1449_p6, %p1443_p3 }
   0xf   :  { %1453 = shalt.err (!%p1450_p7)
}
  0x10   :  { %s1481_s16 = smov 128   ;;  %s1482_s17 = smov 8  }
  0x11   :  { %19 = dma.hbm_to_vmem [thread:$0]  %s2001_s0, 256, %s14_s7, [#allocation3], %s1481_s16, %s1481_s16, %s1482_s17  }
  0x12   :  { %1476 = dma.done.wait [#allocation3], 256  }
  0x13   :  { %1477 = vsyncadd [#allocation3], 4294967040  ;;  %v37_v0 = vlaneseq  ;;  %v1483_v22 = vmov 1.0|1.0   ;;  %v2021_v23 = vmov 0  ;;  %v2027_v29 = vmov 0 }
  0x14   :  { %v1484_v37 = vmov 0.0   ;;  %v2033_v40 = vmov 0  ;;  %v23_v49 = vld [vmem:[#allocation2] sm:$0xff]  ;;  %v2039_v50 = vmov 0  ;;  %v1689_v58 = vld [vmem:[#allocation2 + $0x8] sm:$0xff]  ;;  %s1485_s0 = smov [#allocation5]  }
  0x15   :  { %v1511_v1 = vshrl.u32 %v37_v0, 7  ;;  %v55_v2 = vand.u32 127, %v37_v0  ;;  %v29_v57 = vsub.f32 1.0, %v23_v49  ;;  %s822_s20 = sshll.u32 %s1485_s0, 4  ;;  %s823_s20 = int_to_ptr.vmem [resolvable:$true] %s822_s20 }
  0x16   :  { %s1454_s21 = scalar_lea.vmem %s823_s20, 256  ;;  %p1459_p9 = scmp.lt.s32.totalorder %s823_s20, %s823_s20 }
  0x17   :  { %v39_v3 = vadd.s32 8, %v1511_v1  ;;  %v56_v4 = vand.u32 4294967280, %v1511_v1  ;;  %v1515_v5 = vand.u32 4294967280, %v55_v2  ;;  %v40_v6 = vadd.s32 16, %v1511_v1  ;;  %p1455_p8 = scmp.ne.s32.totalorder %s823_s20, %s1454_s21  ;;  %p1460_p10 = scmp.lt.s32.totalorder %s1454_s21, %s1454_s21 }
  0x18   :  { %v41_v7 = vadd.s32 24, %v1511_v1  ;;  %v42_v8 = vadd.s32 32, %v1511_v1  ;;  %v43_v9 = vadd.s32 40, %v1511_v1  ;;  %v44_v13 = vadd.s32 48, %v1511_v1 }
  0x19   :  { %v57_v10 = vand.u32 4294967280, %v39_v3  ;;  %vm1522_vm0 = vcmp.eq.s32.totalorder %v56_v4, %v1515_v5  ;;  %v58_v12 = vand.u32 4294967280, %v40_v6  ;;  %v45_v17 = vadd.s32 56, %v1511_v1  ;;  %p1461_p11 = por %p1460_p10, %p1459_p9 }
  0x1a   :  { %v59_v14 = vand.u32 4294967280, %v41_v7  ;;  %v60_v15 = vand.u32 4294967280, %v42_v8  ;;  %v61_v16 = vand.u32 4294967280, %v43_v9  ;;  %v62_v26 = vand.u32 4294967280, %v44_v13 }
  0x1b   :  { %vm1529_vm1 = vcmp.eq.s32.totalorder %v57_v10, %v1515_v5  ;;  %vm1534_vm2 = vcmp.eq.s32.totalorder %v58_v12, %v1515_v5  ;;  %v63_v27 = vand.u32 4294967280, %v45_v17  ;;  %v46_v28 = vadd.s32 64, %v1511_v1  ;;  %p1462_p12 = pnand %p1461_p11, %p1455_p8 }
  0x1c   :  { %vm1542_vm3 = vmpackc.low %vm1529_vm1, %vm1522_vm0  ;;  %vm1547_vm4 = vcmp.eq.s32.totalorder %v59_v14, %v1515_v5  ;;  %vm1566_vm6 = vcmp.eq.s32.totalorder %v60_v15, %v1515_v5  ;;  %vm1571_vm7 = vcmp.eq.s32.totalorder %v61_v16, %v1515_v5  ;;  %v47_v30 = vadd.s32 72, %v1511_v1 }
  0x1d   :  { %1217 = vmatprep.subr.msk.bf16.mxu1 %vm1542_vm3, %v1483_v22  ;;  %1313 = vmatprep.subr.msk.bf16.mxu0 %vm1542_vm3, %v1483_v22  ;;  %vm1561_vm5 = vmpackc.low %vm1547_vm4, %vm1534_vm2  ;;  %v48_v31 = vadd.s32 80, %v1511_v1  ;;  %vm1599_vm9 = vcmp.eq.s32.totalorder %v62_v26, %v1515_v5  ;;  %vm1604_vm10 = vcmp.eq.s32.totalorder %v63_v27, %v1515_v5  ;;  %v64_v34 = vand.u32 4294967280, %v46_v28 }
  0x1e   :  { %v2022_v23 = vsel %vm1561_vm5, 4294967295, %v2021_v23  ;;  %1219 = vmatpush3.bf16.msk.msra.mxu1 %vm1542_vm3, %v1483_v22  ;;  %1315 = vmatpush3.bf16.msk.msra.mxu0 %vm1542_vm3, %v1483_v22  ;;  %vm1592_vm8 = vmpackc.low %vm1571_vm7, %vm1566_vm6  ;;  %v49_v35 = vadd.s32 88, %v1511_v1  ;;  %v65_v36 = vand.u32 4294967280, %v47_v30  ;;  %v834_v38 = vsel %vm1522_vm0, 1.0, %v1484_v37 }
  0x1f   :  { %1221 = vmatprep.subr.msk.bf16.mxu1 %vm1561_vm5, %v1483_v22  ;;  %1317 = vmatprep.subr.msk.bf16.mxu0 %vm1561_vm5, %v1483_v22  ;;  %v2028_v29 = vsel %vm1592_vm8, 4294967295, %v2027_v29  ;;  %v835_v39 = vsel %vm1529_vm1, 1.0, %v1484_v37  ;;  %vm1631_vm11 = vmpackc.low %vm1604_vm10, %vm1599_vm9  ;;  %v66_v41 = vand.u32 4294967280, %v48_v31  ;;  %v50_v42 = vadd.s32 96, %v1511_v1 }
  0x20   :  { %v2034_v40 = vsel %vm1631_vm11, 4294967295, %v2033_v40  ;;  %vm1637_vm12 = vcmp.eq.s32.totalorder %v64_v34, %v1515_v5  ;;  %vm1642_vm13 = vcmp.eq.s32.totalorder %v65_v36, %v1515_v5  ;;  %v67_v45 = vand.u32 4294967280, %v49_v35 }
  0x21   :  { %v51_v46 = vadd.s32 104, %v1511_v1  ;;  %v1653_v47 = vsub.f32 %v834_v38, %v834_v38  ;;  %v1655_v48 = vsub.f32 %v835_v39, %v835_v39  ;;  %vm1667_vm14 = vmpackc.low %vm1642_vm13, %vm1637_vm12  ;;  %v68_v51 = vand.u32 4294967280, %v50_v42 }
  0x22   :  { %1223 = vmatpush3.bf16.msk.msra.mxu1 %vm1561_vm5, %v1483_v22  ;;  %1319 = vmatpush3.bf16.msk.msra.mxu0 %vm1561_vm5, %v1483_v22  ;;  %v2040_v50 = vsel %vm1667_vm14, 4294967295, %v2039_v50  ;;  %v52_v52 = vadd.s32 112, %v1511_v1  ;;  %vm1673_vm15 = vcmp.eq.s32.totalorder %v66_v41, %v1515_v5  ;;  %vm1678_vm0 = vcmp.eq.s32.totalorder %v67_v45, %v1515_v5 }
  0x23   :  { %1225 = vmatprep.subr.msk.bf16.mxu1 %vm1592_vm8, %v1483_v22  ;;  %1321 = vmatprep.subr.msk.bf16.mxu0 %vm1592_vm8, %v1483_v22  ;;  %v69_v55 = vand.u32 4294967280, %v51_v46  ;;  %v53_v56 = vadd.s32 120, %v1511_v1  ;;  %v225_v59 = vand.u32 4294901760, %v1653_v47  ;;  %v232_v60 = vand.u32 4294901760, %v1655_v48  ;;  %vm1703_vm1 = vmpackc.low %vm1678_vm0, %vm1673_vm15 }
  0x24   :  { %1424 = vrcp.f32 %v29_v57  ;;  %v70_v0 = vand.u32 4294967280, %v52_v52  ;;  %v30_v2 = vsub.f32 1.0, %v1689_v58  ;;  %v836_v3 = vsel %vm1534_vm2, 1.0, %v1484_v37 }
  0x25   :  { %v71_v1 = vand.u32 4294967280, %v53_v56  ;;  %v226_v4 = vsub.f32 %v1653_v47, %v225_v59  ;;  %v233_v6 = vsub.f32 %v1655_v48, %v232_v60  ;;  %v837_v7 = vsel %vm1547_vm4, 1.0, %v1484_v37 }
  0x26   :  { %1227 = vmatpush3.bf16.msk.msra.mxu1 %vm1592_vm8, %v1483_v22  ;;  %1323 = vmatpush3.bf16.msk.msra.mxu0 %vm1592_vm8, %v1483_v22  ;;  %vm1713_vm8 = vcmp.eq.s32.totalorder %v69_v55, %v1515_v5  ;;  %1426 = vrcp.f32 %v30_v2  ;;  %v1756_v11 = vsub.f32 %v836_v3, %v836_v3  ;;  %v838_v12 = vsel %vm1566_vm6, 1.0, %v1484_v37 }
  0x27   :  { %1229 = vmatprep.subr.msk.bf16.mxu1 %vm1631_vm11, %v1483_v22  ;;  %1325 = vmatprep.subr.msk.bf16.mxu0 %vm1631_vm11, %v1483_v22  ;;  %vm1752_vm5 = vcmp.eq.s32.totalorder %v71_v1, %v1515_v5  ;;  %v839_v13 = vsel %vm1571_vm7, 1.0, %v1484_v37  ;;  %v27_v14 = vadd.f32 1.0, %v23_v49  ;;  %v227_v15 = vand.u32 4294901760, %v226_v4 }
  0x28   :  { %v234_v16 = vand.u32 4294901760, %v233_v6  ;;  %vm25_vm6 = vcmp.ge.f32.partialorder %v23_v49, 0.0  ;;  %v1786_v18 = vsub.f32 %v838_v12, %v838_v12  ;;  %v1788_v19 = vsub.f32 %v839_v13, %v839_v13 }
  0x29   :  { %v840_v24 = vsel %vm1599_vm9, 1.0, %v1484_v37  ;;  %v1344_v25 = vpack.c.bf16 %v232_v60, %v225_v59  ;;  %vm26_vm7 = vcmp.ge.f32.partialorder %v1689_v58, 0.0  ;;  %v28_v26 = vadd.f32 1.0, %v1689_v58 }
  0x2a   :  { %1231 = vmatpush3.bf16.msk.msra.mxu1 %vm1631_vm11, %v1483_v22  ;;  %1327 = vmatpush3.bf16.msk.msra.mxu0 %vm1631_vm11, %v1483_v22  ;;  %vm1708_vm11 = vcmp.eq.s32.totalorder %v68_v51, %v1515_v5  ;;  %v1248_v28 = vpack.c.bf16 %v234_v16, %v227_v15  ;;  %v239_v30 = vand.u32 4294901760, %v1756_v11  ;;  %v841_v32 = vsel %vm1604_vm10, 1.0, %v1484_v37 }
  0x2b   :  { %1233 = vmatprep.subr.msk.bf16.mxu1 %vm1667_vm14, %v1483_v22  ;;  %1329 = vmatprep.subr.msk.bf16.mxu0 %vm1667_vm14, %v1483_v22  ;;  %vm1742_vm2 = vmpackc.low %vm1713_vm8, %vm1708_vm11  ;;  %v1817_v36 = vsub.f32 %v840_v24, %v840_v24  ;;  %v842_v38 = vsel %vm1637_vm12, 1.0, %v1484_v37  ;;  %v843_v39 = vsel %vm1642_vm13, 1.0, %v1484_v37  ;;  %v253_v42 = vand.u32 4294901760, %v1786_v18 }
  0x2c   :  { %v260_v43 = vand.u32 4294901760, %v1788_v19  ;;  %v1841_v44 = vsub.f32 %v841_v32, %v841_v32  ;;  %v240_v46 = vsub.f32 %v1756_v11, %v239_v30  ;;  %v1848_v51 = vsub.f32 %v842_v38, %v842_v38 }
  0x2d   :  { %v844_v52 = vsel %vm1673_vm15, 1.0, %v1484_v37  ;;  %v1854_v56 = vsub.f32 %v843_v39, %v843_v39  ;;  %v845_v57 = vsel %vm1678_vm0, 1.0, %v1484_v37  ;;  %v267_v59 = vand.u32 4294901760, %v1817_v36 }
  0x2e   :  { %1235 = vmatpush3.bf16.msk.msra.mxu1 %vm1667_vm14, %v1483_v22  ;;  %1331 = vmatpush3.bf16.msk.msra.mxu0 %vm1667_vm14, %v1483_v22  ;;  %vm1747_vm14 = vcmp.eq.s32.totalorder %v70_v0, %v1515_v5  ;;  %v1770_v5 = vsub.f32 %v837_v7, %v837_v7  ;;  %v1425_v21 = vpop.eup %1424  ;;  %v254_v53 = vsub.f32 %v1786_v18, %v253_v42  ;;  %v241_v3 = vand.u32 4294901760, %v240_v46 }
  0x2f   :  { %1237 = vmatprep.subr.msk.bf16.mxu1 %vm1703_vm1, %v1483_v22  ;;  %1333 = vmatprep.subr.msk.bf16.mxu0 %vm1703_vm1, %v1483_v22  ;;  %vm1782_vm4 = vmpackc.low %vm1752_vm5, %vm1747_vm14  ;;  %v1807_v27 = vsel %vm25_vm6, %v27_v14, %v1425_v21  ;;  %v261_v1 = vsub.f32 %v1788_v19, %v260_v43  ;;  %v274_v54 = vand.u32 4294901760, %v1841_v44  ;;  %v1869_v6 = vsub.f32 %v844_v52, %v844_v52 }
  0x30   :  { %v246_v31 = vand.u32 4294901760, %v1770_v5  ;;  %v1815_v34 = vand.u32 4294901760, %v1807_v27  ;;  %v1427_v35 = vpop.eup %1426  ;;  %v1871_v7 = vsub.f32 %v845_v57, %v845_v57  ;;  %v846_v13 = vsel %vm1708_vm11, 1.0, %v1484_v37 }
  0x31   :  { %v1837_v41 = vsel %vm26_vm7, %v28_v26, %v1427_v35  ;;  %v847_v14 = vsel %vm1713_vm8, 1.0, %v1484_v37  ;;  %v1352_v16 = vpack.c.bf16 %v260_v43, %v253_v42  ;;  %v255_v21 = vand.u32 4294901760, %v254_v53 }
  0x32   :  { %1239 = vmatpush3.bf16.msk.msra.mxu1 %vm1703_vm1, %v1483_v22  ;;  %1335 = vmatpush3.bf16.msk.msra.mxu0 %vm1703_vm1, %v1483_v22  ;;  %v1833_v33 = vsub.f32 %v1807_v27, %v1815_v34  ;;  %v1844_v45 = vand.u32 4294901760, %v1837_v41  ;;  %v247_v49 = vsub.f32 %v1770_v5, %v246_v31  ;;  %v1348_v0 = vpack.c.bf16 %v246_v31, %v239_v30 }
  0x33   :  { %1241 = vmatprep.subr.msk.bf16.mxu1 %vm1742_vm2, %v1483_v22  ;;  %1337 = vmatprep.subr.msk.bf16.mxu0 %vm1742_vm2, %v1483_v22  ;;  %v268_v24 = vsub.f32 %v1817_v36, %v267_v59  ;;  %v281_v26 = vand.u32 4294901760, %v1848_v51  ;;  %v288_v30 = vand.u32 4294901760, %v1854_v56  ;;  %v262_v32 = vand.u32 4294901760, %v261_v1 }
  0x34   :  { %v204_v55 = vand.u32 4294901760, %v1833_v33  ;;  %v1861_v58 = vsub.f32 %v1837_v41, %v1844_v45  ;;  %v248_v4 = vand.u32 4294901760, %v247_v49  ;;  %v275_v63 = vsub.f32 %v1841_v44, %v274_v54 }
  0x35   :  { %v1885_v35 = vsub.f32 %v846_v13, %v846_v13  ;;  %v1887_v38 = vsub.f32 %v847_v14, %v847_v14  ;;  %v849_v39 = vsel %vm1752_vm5, 1.0, %v1484_v37  ;;  %v269_v42 = vand.u32 4294901760, %v268_v24 }
  0x36   :  { %1243 = vmatpush3.bf16.msk.msra.mxu1 %vm1742_vm2, %v1483_v22  ;;  %1339 = vmatpush3.bf16.msk.msra.mxu0 %vm1742_vm2, %v1483_v22  ;;  %v205_v60 = vsub.f32 %v1833_v33, %v204_v55  ;;  %v214_v2 = vand.u32 4294901760, %v1861_v58  ;;  %v1252_v62 = vpack.c.bf16 %v248_v4, %v241_v3  ;;  %v282_v43 = vsub.f32 %v1848_v51, %v281_v26 }
  0x37   :  { %1245 = vmatprep.subr.msk.bf16.mxu1 %vm1782_vm4, %v1483_v22  ;;  %1341 = vmatprep.subr.msk.bf16.mxu0 %vm1782_vm4, %v1483_v22  ;;  %v289_v46 = vsub.f32 %v1854_v56, %v288_v30  ;;  %v295_v49 = vand.u32 4294901760, %v1869_v6  ;;  %v1256_v52 = vpack.c.bf16 %v262_v32, %v255_v21  ;;  %v1356_v9 = vpack.c.bf16 %v274_v54, %v267_v59 }
  0x38   :  { %1143 = vmatprep.mubr.f32.mxu0 %v204_v55  ;;  %v206_v12 = vand.u32 4294901760, %v205_v60  ;;  %v215_v15 = vsub.f32 %v1861_v58, %v214_v2  ;;  %v276_v55 = vand.u32 4294901760, %v275_v63  ;;  %v302_v57 = vand.u32 4294901760, %v1871_v7 }
  0x39   :  { %v1902_v10 = vsub.f32 %v849_v39, %v849_v39  ;;  %v290_v60 = vand.u32 4294901760, %v289_v46  ;;  %v309_v53 = vand.u32 4294901760, %v1885_v35  ;;  %v1360_v59 = vpack.c.bf16 %v288_v30, %v281_v26 }
  0x3a   :  { %1247 = vmatpush3.bf16.msk.msra.mxu1 %vm1782_vm4, %v1483_v22  ;;  %1343 = vmatpush3.bf16.msk.msra.mxu0 %vm1782_vm4, %v1483_v22  ;;  %v216_v31 = vand.u32 4294901760, %v215_v15  ;;  %v1260_v1 = vpack.c.bf16 %v276_v55, %v269_v42  ;;  %v316_v3 = vand.u32 4294901760, %v1887_v38  ;;  %v1280_v46 = vpack.c.bf16 %v1655_v48, %v1653_v47 }
  0x3b   :  { %1249 = vmatprep.subr.bf16.mxu1 %v1248_v28  ;;  %1345 = vmatprep.subr.bf16.mxu0 %v1344_v25  ;;  %v310_v13 = vsub.f32 %v1885_v35, %v309_v53  ;;  %v330_v21 = vand.u32 4294901760, %v1902_v10  ;;  %vm2059_vm5 = vnez %v2022_v23  ;;  %v1288_v20 = vpack.c.bf16 %v1788_v19, %v1786_v18 }
  0x3c   :  { %1038 = vmatprep.mubr.f32.mxu1 %v206_v12  ;;  %v1364_v12 = vpack.c.bf16 %v302_v57, %v295_v49  ;;  %v317_v15 = vsub.f32 %v1887_v38, %v316_v3  ;;  %v1368_v26 = vpack.c.bf16 %v316_v3, %v309_v53  ;;  %v1292_v23 = vpack.c.bf16 %v1841_v44, %v1817_v36 }
  0x3d   :  { %1144 = vmatmul.mubr.f32.vlgmr.msra.gmra.mrb[0].mxu0 %v214_v2  ;;  %1039 = vmatmul.mubr.f32.vlgmr.msra.gmra.mrb[0].mxu1 %v216_v31  ;;  %v303_v2 = vsub.f32 %v1871_v7, %v302_v57  ;;  %v311_v24 = vand.u32 4294901760, %v310_v13  ;;  %v331_v32 = vsub.f32 %v1902_v10, %v330_v21  ;;  %vm2061_vm8 = vnez %v2034_v40 }
  0x3e   :  { %1347 = vmatpush3.bf16.msra.mxu0 %v1344_v25  ;;  %1178 = vmatprep.mubr.f32.mxu0 %v1815_v34  ;;  %v848_v25 = vsel %vm1747_vm14, 1.0, %v1484_v37  ;;  %v318_v31 = vand.u32 4294901760, %v317_v15  ;;  %v1296_v47 = vpack.c.bf16 %v1854_v56, %v1848_v51  ;;  %vm2062_vm9 = vnez %v2040_v50 }
  0x3f   :  { %1349 = vmatprep.subr.bf16.mxu0 %v1348_v0  ;;  %1251 = vmatpush3.bf16.msra.mxu1 %v1248_v28  ;;  %v1900_v37 = vsub.f32 %v848_v25, %v848_v25  ;;  %v283_v28 = vand.u32 4294901760, %v282_v43  ;;  %v304_v14 = vand.u32 4294901760, %v303_v2  ;;  %v332_v39 = vand.u32 4294901760, %v331_v32 }
  0x40   :  { %1253 = vmatprep.subr.bf16.mxu1 %v1252_v62  ;;  %1073 = vmatprep.mubr.f32.mxu1 %v1815_v34  ;;  %v1272_v63 = vpack.c.bf16 %v318_v31, %v311_v24  ;;  %v1304_v40 = vpack.c.bf16 %v1887_v38, %v1885_v35 }
  0x41   :  { %v1264_v4 = vpack.c.bf16 %v290_v60, %v283_v28  ;;  %v1308_v48 = vpack.c.bf16 %v1902_v10, %v1900_v37 }
  0x42   :  { %1351 = vmatpush3.bf16.msra.mxu0 %v1348_v0  ;;  %v296_v0 = vsub.f32 %v1869_v6, %v295_v49  ;;  %v1284_v49 = vpack.c.bf16 %v1770_v5, %v1756_v11 }
  0x43   :  { %1353 = vmatprep.subr.bf16.mxu0 %v1352_v16  ;;  %1255 = vmatpush3.bf16.msra.mxu1 %v1252_v62 }
  0x44   :  { %1257 = vmatprep.subr.bf16.mxu1 %v1256_v52  ;;  %v297_v54 = vand.u32 4294901760, %v296_v0 }
  0x46   :  { %1355 = vmatpush3.bf16.msra.mxu0 %v1352_v16  ;;  %v323_v16 = vand.u32 4294901760, %v1900_v37  ;;  %v1268_v30 = vpack.c.bf16 %v304_v14, %v297_v54 }
  0x47   :  { %1357 = vmatprep.subr.bf16.mxu0 %v1356_v9  ;;  %1259 = vmatpush3.bf16.msra.mxu1 %v1256_v52 }
  0x48   :  { %1261 = vmatprep.subr.bf16.mxu1 %v1260_v1  ;;  %v324_v62 = vsub.f32 %v1900_v37, %v323_v16  ;;  %v1372_v42 = vpack.c.bf16 %v330_v21, %v323_v16 }
  0x4a   :  { %1359 = vmatpush3.bf16.msra.mxu0 %v1356_v9  ;;  %v325_v25 = vand.u32 4294901760, %v324_v62 }
  0x4b   :  { %1361 = vmatprep.subr.bf16.mxu0 %v1360_v59  ;;  %1263 = vmatpush3.bf16.msra.mxu1 %v1260_v1 }
  0x4c   :  { %1265 = vmatprep.subr.bf16.mxu1 %v1264_v4  ;;  %v1276_v43 = vpack.c.bf16 %v332_v39, %v325_v25 }
  0x4e   :  { %1363 = vmatpush3.bf16.msra.mxu0 %v1360_v59 }
  0x4f   :  { %1365 = vmatprep.subr.bf16.mxu0 %v1364_v12  ;;  %1267 = vmatpush3.bf16.msra.mxu1 %v1264_v4 }
  0x50   :  { %1269 = vmatprep.subr.bf16.mxu1 %v1268_v30 }
  0x52   :  { %1367 = vmatpush3.bf16.msra.mxu0 %v1364_v12 }
  0x53   :  { %1369 = vmatprep.subr.bf16.mxu0 %v1368_v26  ;;  %1271 = vmatpush3.bf16.msra.mxu1 %v1268_v30 }
  0x54   :  { %1273 = vmatprep.subr.bf16.mxu1 %v1272_v63 }
  0x56   :  { %1371 = vmatpush3.bf16.msra.mxu0 %v1368_v26 }
  0x57   :  { %1373 = vmatprep.subr.bf16.mxu0 %v1372_v42  ;;  %1275 = vmatpush3.bf16.msra.mxu1 %v1272_v63 }
  0x58   :  { %1277 = vmatprep.subr.bf16.mxu1 %v1276_v43 }
  0x5a   :  { %1375 = vmatpush3.bf16.msra.mxu0 %v1372_v42 }
  0x5b   :  { %1377 = vmatprep.subr.msk.bf16.mxu0 %vm1542_vm3, %v1483_v22  ;;  %1279 = vmatpush3.bf16.msra.mxu1 %v1276_v43 }
  0x5c   :  { %1281 = vmatprep.subr.bf16.mxu1 %v1280_v46 }
  0x5d   :  { %1179 = vmatmul.mubr.f32.vlgmr.msra.gmra.mrb[0].mxu0 %v1844_v45 }
  0x5e   :  { %1379 = vmatpush3.bf16.msk.msra.mxu0 %vm1542_vm3, %v1483_v22  ;;  %1213 = vmatprep.mubr.f32.mxu0 %v1815_v34  ;;  %vm2060_vm3 = vnez %v2028_v29  ;;  %v1300_v29 = vpack.c.bf16 %v1871_v7, %v1869_v6 }
  0x5f   :  { %1381 = vmatprep.subr.msk.bf16.mxu0 %vm2059_vm5, %v1483_v22  ;;  %1074 = vmatmul.mubr.f32.vlgmr.msra.gmra.mrb[0].mxu1 %v1844_v45 }
  0x60   :  { %1283 = vmatpush3.bf16.msra.mxu1 %v1280_v46  ;;  %1108 = vmatprep.mubr.f32.mxu1 %v1833_v33 }
  0x61   :  { %1285 = vmatprep.subr.bf16.mxu1 %v1284_v49 }
  0x62   :  { %1383 = vmatpush3.bf16.msk.msra.mxu0 %vm2059_vm5, %v1483_v22 }
  0x63   :  { %1385 = vmatprep.subr.msk.bf16.mxu0 %vm2060_vm3, %v1483_v22 }
  0x64   :  { %1287 = vmatpush3.bf16.msra.mxu1 %v1284_v49 }
  0x65   :  { %1289 = vmatprep.subr.bf16.mxu1 %v1288_v20 }
  0x66   :  { %1387 = vmatpush3.bf16.msk.msra.mxu0 %vm2060_vm3, %v1483_v22 }
  0x67   :  { %1389 = vmatprep.subr.msk.bf16.mxu0 %vm2061_vm8, %v1483_v22 }
  0x68   :  { %1291 = vmatpush3.bf16.msra.mxu1 %v1288_v20 }
  0x69   :  { %1293 = vmatprep.subr.bf16.mxu1 %v1292_v23 }
  0x6a   :  { %1391 = vmatpush3.bf16.msk.msra.mxu0 %vm2061_vm8, %v1483_v22 }
  0x6b   :  { %1393 = vmatprep.subr.msk.bf16.mxu0 %vm2062_vm9, %v1483_v22 }
  0x6c   :  { %1295 = vmatpush3.bf16.msra.mxu1 %v1292_v23 }
  0x6d   :  { %1297 = vmatprep.subr.bf16.mxu1 %v1296_v47 }
  0x6e   :  { %1395 = vmatpush3.bf16.msk.msra.mxu0 %vm2062_vm9, %v1483_v22 }
  0x6f   :  { %1397 = vmatprep.subr.msk.bf16.mxu0 %vm1703_vm1, %v1483_v22 }
  0x70   :  { %1299 = vmatpush3.bf16.msra.mxu1 %v1296_v47 }
  0x71   :  { %1301 = vmatprep.subr.bf16.mxu1 %v1300_v29 }
  0x72   :  { %1399 = vmatpush3.bf16.msk.msra.mxu0 %vm1703_vm1, %v1483_v22 }
  0x73   :  { %1401 = vmatprep.subr.msk.bf16.mxu0 %vm1742_vm2, %v1483_v22 }
  0x74   :  { %1303 = vmatpush3.bf16.msra.mxu1 %v1300_v29 }
  0x75   :  { %1305 = vmatprep.subr.bf16.mxu1 %v1304_v40 }
  0x76   :  { %1403 = vmatpush3.bf16.msk.msra.mxu0 %vm1742_vm2, %v1483_v22 }
  0x77   :  { %1405 = vmatprep.subr.msk.bf16.mxu0 %vm1782_vm4, %v1483_v22 }
  0x78   :  { %1307 = vmatpush3.bf16.msra.mxu1 %v1304_v40 }
  0x79   :  { %1309 = vmatprep.subr.bf16.mxu1 %v1308_v48 }
  0x7a   :  { %1407 = vmatpush3.bf16.msk.msra.mxu0 %vm1782_vm4, %v1483_v22 }
  0x7c   :  { %1311 = vmatpush3.bf16.msra.mxu1 %v1308_v48 }
  0x7d   :  { %1214 = vmatmul.mubr.f32.vlgmr.msra.gmra.mrb[0].mxu0 %v1844_v45 }
  0x7f   :  { %1109 = vmatmul.mubr.f32.vlgmr.msra.gmra.mrb[0].mxu1 %v1861_v58 }
 0x150   :  { %v1215_v50 = vpop.f32.mrb[0].mxu0 }
 0x151   :  { %v795_v61 = vpop.f32.mrb[1].mxu0 }
 0x152   :  { %v1110_v8 = vpop.f32.mrb[0].mxu1 }
 0x153   :  { %v1408_v11 = vadd.f32 %v1215_v50, %v1110_v8  ;;  %v479_v5 = vpop.f32.mrb[1].mxu1 }
 0x154   :  { %v1409_v18 = vadd.f32 %v795_v61, %v479_v5 }
 0x155   :  { %1428 = vrcp.f32 %v1408_v11 }
 0x156   :  { %1430 = vrcp.f32 %v1409_v18 }
 0x15f   :  { %v1429_v19 = vpop.eup %1428 }
 0x160   :  { %v1431_v34 = vpop.eup %1430  ;;  %v808_v36 = vmul.f32 %v1429_v19, %v1408_v11 }
 0x161   :  { %v807_v33 = vmul.f32 %v1431_v34, %v1409_v18 }
 0x162   :  { %v810_v17 = vsub.f32 2.0, %v808_v36 }
 0x163   :  { %v809_v22 = vsub.f32 2.0, %v807_v33 }
 0x164   :  { %v812_v44 = vmul.f32 %v1429_v19, %v810_v17 }
 0x165   :  { %v811_v45 = vmul.f32 %v1431_v34, %v809_v22 }
 0x166   :  { %v814_v51 = vmul.f32 %v812_v44, %v1837_v41 }
 0x167   :  { %v813_v56 = vmul.f32 %v811_v45, %v1807_v27 }
 0x168   :  { %816 = vst [vmem:[#allocation5 + $0x8] sm:$0xff] %v814_v51 }
 0x169   :  { %815 = vst [vmem:[#allocation5] sm:$0xff] %v813_v56 }
 0x16a   :  { %1465 = shalt.err (!%p1462_p12)
}
 0x16b   :  { %s1466_s24 = scalar_lea.hbm %s2002_s1, 256 }
 0x16c   :  { %p1467_p13 = scmp.ne.s32.totalorder %s2002_s1, %s1466_s24  ;;  %p1470_p0 = scmp.lt.u32.totalorder %s1466_s24, %s2002_s1 }
 0x16e   :  { %p1472_p1 = pnand %p1470_p0, %p1467_p13 }
 0x170   :  { %1475 = shalt.err (!%p1472_p1)
}
 0x171   :  { %828 = dma.vmem_to_hbm [thread:$0]  %s823_s20, 256, %s2002_s1, [#allocation4], %s1481_s16, %s1481_s16, %s1482_s17  }
 0x172   :  { %1478 = dma.done.wait [#allocation4], 256  }
 0x173   :  { %1479 = vsyncadd [#allocation4], 4294967040 }
 0x174   :  { %832 = vsyncpa [#allocation3], 1 }
 0x175   :  { %833 = vsyncpa [#allocation4], 1 }

</bundles_post_ra>
